<compile_context>
chip_gen: v5e
topology: v5e:2x2
jax: 0.10.0
libtpu: 0.0.40
codegen_flags: <defaults>
</compile_context>

<pallas_src>
import jax
import jax.numpy as jnp
from jax.experimental import pallas as pl
from jax.experimental.pallas import tpu as pltpu


# ----------------------------------------------------------------------------
# Kernels
# ----------------------------------------------------------------------------
def _make_se_kernel(hw_true, gate_dtype):
    """(TB, C, HW) layout: HW on the lane axis (HW >= 128)."""
    inv_hw = 1.0 / float(hw_true)

    def se_kernel(x_ref, w1_ref, w2_ref, o_ref):
        # Squeeze: global average pool over the spatial (lane) axis.
        # f32 accumulation; the f32 view is consumed here and NOT kept live.
        pooled = jnp.sum(x_ref[...].astype(jnp.float32), axis=-1) * inv_hw  # (TB, C)
        # Excitation MLP (mid is zero-padded to a lane-dense width; padded
        # columns/rows are zero so the result is unchanged).
        h = jnp.maximum(
            jnp.dot(pooled, w1_ref[...], preferred_element_type=jnp.float32), 0.0)
        s = jax.nn.sigmoid(
            jnp.dot(h, w2_ref[...], preferred_element_type=jnp.float32))     # (TB, C)
        # Scale: re-read x from VMEM (cheap) instead of holding an f32 copy.
        xg = x_ref[...].astype(gate_dtype)
        o_ref[...] = (xg * s.astype(gate_dtype)[:, :, None]).astype(o_ref.dtype)

    return se_kernel


def _make_se_kernel_cl(hw_true, gate_dtype):
    """(TB, HW, C) channels-last layout: C on the lane axis (HW < 128)."""
    inv_hw = 1.0 / float(hw_true)

    def se_kernel(x_ref, w1_ref, w2_ref, o_ref):
        # Pool over the spatial (sublane) axis; C stays lane-dense.
        pooled = jnp.sum(x_ref[...].astype(jnp.float32), axis=1) * inv_hw    # (TB, C)
        h = jnp.maximum(
            jnp.dot(pooled, w1_ref[...], preferred_element_type=jnp.float32), 0.0)
        s = jax.nn.sigmoid(
            jnp.dot(h, w2_ref[...], preferred_element_type=jnp.float32))     # (TB, C)
        xg = x_ref[...].astype(gate_dtype)
        o_ref[...] = (xg * s.astype(gate_dtype)[:, None, :]).astype(o_ref.dtype)

    return se_kernel


# ----------------------------------------------------------------------------
# Hardware queries (safe fallbacks; only used for block/limit sizing)
# ----------------------------------------------------------------------------
def _vmem_capacity_bytes():
    try:
        return int(pltpu.get_tpu_info().vmem_capacity_bytes)
    except Exception:
        return 64 * 1024 * 1024  # conservative (v7x-sized) fallback


def _is_v5():
    try:
        return "v5" in jax.devices()[0].device_kind.lower()
    except Exception:
        return False


# ----------------------------------------------------------------------------
# Wrapper
# ----------------------------------------------------------------------------
def se_block(x_nchw, w1_t, w2_t, *, donate_input=False):
    """SE block forward.

    x_nchw: (B, C, H, W); w1_t: (C, C//r) = fc1.weight.T; w2_t: (C//r, C).
    """
    b, c, h, w = x_nchw.shape
    hw = h * w

    # --- generation-aware block / VMEM budget -------------------------------
    vmem = _vmem_capacity_bytes()
    if vmem >= 100 * 1024 * 1024:          # v5e / v6e: 128 MiB physical VMEM
        target_block_bytes = 16 * 1024 * 1024
        vmem_limit = 112 * 1024 * 1024
    else:                                  # v7x: 64 MiB physical VMEM
        target_block_bytes = 6 * 1024 * 1024
        vmem_limit = 56 * 1024 * 1024

    # Gate-multiply dtype: bf16 on bf16-VALU chips (v6e/v7x), f32 otherwise.
    if x_nchw.dtype == jnp.bfloat16 and not _is_v5():
        gate_dtype = jnp.bfloat16
    else:
        gate_dtype = jnp.float32

    # --- lane-dense weights: pad mid = C//reduction up to a multiple of 128 --
    # Zero columns of w1 give zero (post-ReLU) hidden units, which multiply
    # zero rows of w2 -> the excitation output is mathematically unchanged.
    mid = w1_t.shape[1]
    mid_pad = ((mid + 127) // 128) * 128
    if mid_pad != mid:
        w1_p = jnp.pad(w1_t, ((0, 0), (0, mid_pad - mid)))
        w2_p = jnp.pad(w2_t, ((0, mid_pad - mid), (0, 0)))
    else:
        w1_p, w2_p = w1_t, w2_t

    # --- layout: HW on lanes when it spans >= 1 vreg, else channels-last ----
    channels_last = hw < 128
    if channels_last:
        x_flat = x_nchw.reshape(b, c, hw).transpose(0, 2, 1)   # (B, HW, C)
    else:
        x_flat = x_nchw.reshape(b, c, hw)                      # (B, C, HW), free

    # --- batch tiling: cdiv (no divisor search), grid >= 2 when possible ----
    itemsize = jnp.dtype(x_flat.dtype).itemsize
    row_bytes = c * hw * itemsize
    tb = max(1, min(b, target_block_bytes // row_bytes))
    if b >= 2:
        tb = min(tb, pl.cdiv(b, 2))     # >= 2 grid steps: both v7x TCs busy
    grid = (pl.cdiv(b, tb),)
    # TODO(synk): if a single batch row (C*HW) exceeds the VMEM budget, a
    # two-pass kernel (pool pass, then HW-tiled scale pass) is needed.

    block_shape = (tb, hw, c) if channels_last else (tb, c, hw)
    kernel = (_make_se_kernel_cl if channels_last else _make_se_kernel)(hw, gate_dtype)

    out_flat = pl.pallas_call(
        kernel,
        out_shape=jax.ShapeDtypeStruct(x_flat.shape, x_flat.dtype),
        grid_spec=pltpu.PrefetchScalarGridSpec(
            num_scalar_prefetch=0,
            grid=grid,
            in_specs=[
                # x: tiled over batch only; last two dims are the full array
                # dims (satisfies the (8,128) rule with no padding).
                pl.BlockSpec(block_shape, lambda i: (i, 0, 0)),
                # Weights: constant block index -> resident in VMEM.
                pl.BlockSpec(w1_p.shape, lambda i: (0, 0)),
                pl.BlockSpec(w2_p.shape, lambda i: (0, 0)),
            ],
            out_specs=pl.BlockSpec(block_shape, lambda i: (i, 0, 0)),
            # NOTE: pipeline_mode=pl.Buffered(3) on x/out is worth a sweep on
            # v7x once block size is final; default double-buffering kept here.
        ),
        compiler_params=pltpu.CompilerParams(
            dimension_semantics=("parallel",),
            vmem_limit_bytes=vmem_limit,
        ),
        input_output_aliases=({0: 0} if donate_input else {}),
    )(x_flat, w1_p, w2_p)

    if channels_last:
        return out_flat.transpose(0, 2, 1).reshape(b, c, h, w)
    return out_flat.reshape(b, c, h, w)


def se_block_ref(x_nchw, w1_t, w2_t):
    """Pure-JAX reference matching the PyTorch forward (bias=False linears)."""
    y = jnp.mean(x_nchw, axis=(2, 3))                # AdaptiveAvgPool2d(1)
    y = jnp.maximum(y @ w1_t, 0.0)                   # Linear + ReLU
    y = jax.nn.sigmoid(y @ w2_t)                     # Linear + Sigmoid
    return x_nchw * y[:, :, None, None]


if __name__ == "__main__":
    key = jax.random.PRNGKey(0)

    # Case 1: HW = 256 >= 128 -> (B, C, HW) layout, no padding, no post-slice.
    B, C, H, W = 2, 32, 16, 16
    reduction = 16
    mid = C // reduction
    kx, k1, k2, key = jax.random.split(key, 4)
    x = jax.random.normal(kx, (B, C, H, W), dtype=jnp.float32)
    w1_t = jax.random.normal(k1, (C, mid), dtype=jnp.float32) * 0.1   # fc1.weight.T
    w2_t = jax.random.normal(k2, (mid, C), dtype=jnp.float32) * 0.1   # fc2.weight.T

    out = jax.block_until_ready(se_block(x, w1_t, w2_t))
    ref = se_block_ref(x, w1_t, w2_t)
    assert out.shape == (B, C, H, W)
    assert jnp.allclose(out, ref, atol=1e-5, rtol=1e-5), "case1 mismatch vs reference"

    # Case 2: HW = 49 < 128 -> channels-last path; B=3 exercises cdiv tiling
    # with a masked partial last batch block.
    B2, C2, H2, W2 = 3, 128, 7, 7
    mid2 = C2 // reduction
    kx, k1, k2, key = jax.random.split(key, 4)
    x2 = jax.random.normal(kx, (B2, C2, H2, W2), dtype=jnp.float32)
    w1b = jax.random.normal(k1, (C2, mid2), dtype=jnp.float32) * 0.1
    w2b = jax.random.normal(k2, (mid2, C2), dtype=jnp.float32) * 0.1

    out2 = jax.block_until_ready(se_block(x2, w1b, w2b))
    ref2 = se_block_ref(x2, w1b, w2b)
    assert out2.shape == (B2, C2, H2, W2)
    assert jnp.allclose(out2, ref2, atol=1e-5, rtol=1e-5), "case2 mismatch vs reference"

    print("KERNEL_OK")
</pallas_src>

<mosaic_0001>
module attributes {stable_mosaic.version = 11 : i64} {
  func.func @se_kernel(%arg0: i32, %arg1: memref<1x32x256xf32, #tpu.memory_space<vmem>>, %arg2: memref<32x128xf32, #tpu.memory_space<vmem>>, %arg3: memref<128x32xf32, #tpu.memory_space<vmem>>, %arg4: memref<1x32x256xf32, #tpu.memory_space<vmem>>) attributes {dimension_semantics = [#tpu.dimension_semantics<parallel>], iteration_bounds = array<i64: 2>, scalar_prefetch = 0 : i64, scratch_operands = 0 : i64, tpu.core_type = #tpu.core_type<tc>, window_params = [{transform_indices = @transform_0, window_bounds = array<i64: 1, 32, 256>}, {pipeline_mode = #tpu.pipeline_mode<synchronous>, transform_indices = @transform_1, window_bounds = array<i64: 32, 128>}, {pipeline_mode = #tpu.pipeline_mode<synchronous>, transform_indices = @transform_2, window_bounds = array<i64: 128, 32>}, {transform_indices = @transform_3, window_bounds = array<i64: 1, 32, 256>}]} {
    %c0 = arith.constant 0 : index
    %c0_0 = arith.constant 0 : index
    %c0_1 = arith.constant 0 : index
    %0 = vector.load %arg1[%c0, %c0_0, %c0_1] : memref<1x32x256xf32, #tpu.memory_space<vmem>>, vector<1x32x256xf32>
    %cst = arith.constant dense<0.000000e+00> : vector<1x32xf32>
    %1 = vector.multi_reduction <add>, %0, %cst [2] : vector<1x32x256xf32> to vector<1x32xf32>
    %cst_2 = arith.constant 3.906250e-03 : f32
    %2 = vector.broadcast %cst_2 : f32 to vector<1x32xf32>
    %3 = arith.mulf %1, %2 : vector<1x32xf32>
    %c0_3 = arith.constant 0 : index
    %c0_4 = arith.constant 0 : index
    %4 = vector.load %arg2[%c0_3, %c0_4] : memref<32x128xf32, #tpu.memory_space<vmem>>, vector<32x128xf32>
    %cst_5 = arith.constant dense<0.000000e+00> : vector<1x128xf32>
    %5 = tpu.matmul %3, %4, %cst_5 {dimension_numbers = #tpu.dot_dimension_numbers<[1], [0], [0], [1], [0, 0, 1, 1], [], []>} : vector<1x32xf32>, vector<32x128xf32>, vector<1x128xf32> -> vector<1x128xf32>
    %cst_6 = arith.constant 0.000000e+00 : f32
    %6 = vector.broadcast %cst_6 : f32 to vector<1x128xf32>
    %7 = arith.maximumf %5, %6 : vector<1x128xf32>
    %c0_7 = arith.constant 0 : index
    %c0_8 = arith.constant 0 : index
    %8 = vector.load %arg3[%c0_7, %c0_8] : memref<128x32xf32, #tpu.memory_space<vmem>>, vector<128x32xf32>
    %cst_9 = arith.constant dense<0.000000e+00> : vector<1x32xf32>
    %9 = tpu.matmul %7, %8, %cst_9 {dimension_numbers = #tpu.dot_dimension_numbers<[1], [0], [0], [1], [0, 0, 1, 1], [], []>} : vector<1x128xf32>, vector<128x32xf32>, vector<1x32xf32> -> vector<1x32xf32>
    %10 = arith.negf %9 : vector<1x32xf32>
    %11 = math.exp %10 : vector<1x32xf32>
    %cst_10 = arith.constant 1.000000e+00 : f32
    %12 = vector.broadcast %cst_10 : f32 to vector<1x32xf32>
    %13 = arith.addf %12, %11 : vector<1x32xf32>
    %14 = arith.divf %12, %13 : vector<1x32xf32>
    %c0_11 = arith.constant 0 : index
    %c0_12 = arith.constant 0 : index
    %c0_13 = arith.constant 0 : index
    %15 = vector.load %arg1[%c0_11, %c0_12, %c0_13] : memref<1x32x256xf32, #tpu.memory_space<vmem>>, vector<1x32x256xf32>
    %16 = vector.shape_cast %14 : vector<1x32xf32> to vector<1x32x1xf32>
    %17 = vector.broadcast %16 : vector<1x32x1xf32> to vector<1x32x256xf32>
    %18 = arith.mulf %15, %17 : vector<1x32x256xf32>
    %c0_14 = arith.constant 0 : index
    %c0_15 = arith.constant 0 : index
    %c0_16 = arith.constant 0 : index
    %19 = vector.load %arg4[%c0_14, %c0_15, %c0_16] : memref<1x32x256xf32, #tpu.memory_space<vmem>>, vector<1x32x256xf32>
    tpu.vector_store %arg4[%c0_14, %c0_15, %c0_16], %18 {strides = array<i32>} : memref<1x32x256xf32, #tpu.memory_space<vmem>>, vector<1x32x256xf32>,
    return
  }
  func.func @transform_0(%arg0: i32) -> (i32, i32, i32) {
    %c0_i32 = arith.constant 0 : i32
    %c0_i32_0 = arith.constant 0 : i32
    %c0_i32_1 = arith.constant 0 : i32
    return %arg0, %c0_i32, %c0_i32_0 : i32, i32, i32
  }
  func.func @transform_1(%arg0: i32) -> (i32, i32) {
    %c0_i32 = arith.constant 0 : i32
    %c0_i32_0 = arith.constant 0 : i32
    %c0_i32_1 = arith.constant 0 : i32
    return %c0_i32, %c0_i32_0 : i32, i32
  }
  func.func @transform_2(%arg0: i32) -> (i32, i32) {
    %c0_i32 = arith.constant 0 : i32
    %c0_i32_0 = arith.constant 0 : i32
    %c0_i32_1 = arith.constant 0 : i32
    return %c0_i32, %c0_i32_0 : i32, i32
  }
  func.func @transform_3(%arg0: i32) -> (i32, i32, i32) {
    %c0_i32 = arith.constant 0 : i32
    %c0_i32_0 = arith.constant 0 : i32
    %c0_i32_1 = arith.constant 0 : i32
    return %arg0, %c0_i32, %c0_i32_0 : i32, i32, i32
  }
}

</mosaic_0001>

<bundles_post_ra>
// kernel: tpu_custom_call.1
= control target key start
LH: loop header
LB: loop body
LE: loop exit
PB: predicated region body
PF: predicated region fallthrough
CT: control target
= control target key end

     0   :  { %8 = vsyncpa [#allocation3], 0  ;;  %s743_s0 = inlined_call_operand.vmem [shape: f32[2,32,256], index: 0, kind: input, shape index: {}]   ;;  %s744_s1 = inlined_call_operand.vmem [shape: f32[32,128], index: 1, kind: input, shape index: {}]   ;;  %s745_s2 = inlined_call_operand.vmem [shape: f32[128,32], index: 2, kind: input, shape index: {}]   ;;  %s746_s3 = inlined_call_operand.hbm [shape: f32[2,32,256], index: 3, kind: output, shape index: {}]  }
   0x1   :  { %10 = vsyncpa [#allocation3 + $0x1], 0  ;;  %s566_s12 = smov 0   ;;  %s568_s13 = smov 0  }
   0x2   :  { %s570_s14 = smov 0   ;;  %s572_s15 = smov 0  }
   0x3 LB: > { %s587_s16 = sadd.s32 4294967295, %s542_s15   ;;  %s414_s17 = sadd.s32 4294967294, %s542_s15   ;;  %s542_s15 = sphi %s572_s15, %s752_s15   ;;  %s538_s14 = sphi %s570_s14, %s751_s14   ;;  %s534_s13 = sphi %s568_s13, %s750_s13   ;;  %s530_s12 = sphi %s566_s12, %s749_s12  }
   0x4   : > { %s591_s18 = sadd.s32 1, %s542_s15   ;;  %s91_s19 = sadd.s32 1, %s538_s14 }
   0x5   : > { %s88_s20 = ssub.s32 %s542_s15, %s591_s18  ;;  %p101_p0 = scmp.ne.s32.totalorder %s538_s14, %s534_s13 }
   0x6   : > { %p89_p1 = scmp.eq.s32.totalorder %s88_s20, 0  ;;  %p102_p2 = scmp.eq.s32.totalorder %s587_s16, 1 }
   0x7   : > { %p107_p3 = scmp.ne.s32.totalorder %s534_s13, %s530_s12  ;;  %p108_p4 = scmp.eq.s32.totalorder %s414_s17, 1 }
   0x8   : > { %s602_s21 = scalar_select %p89_p1, %s538_s14, %s91_s19  }
   0x9   : > { %p604_p5 = por %p102_p2, %p101_p0  ;;  %p608_p6 = por %p108_p4, %p107_p3 }
   0xa   : > { %p417_p7 = scmp.ge.s32.totalorder %s542_s15, 1  ;;  %p140_p8 = scmp.lt.s32.totalorder %s542_s15, 3 }
   0xc   : > { %p141_p9 = pnand %p417_p7, %p140_p8 }
   0xd   : > { %p164_p10 = scmp.lt.s32.totalorder (!%p141_p9), %s587_s16, 1  ;;  %s161_s6 = sand.u32 (!%p141_p9), 1, %s534_s13  }
   0xe   : > { %144 = sbr.rel (%p141_p9) target bundleno = 565 (0x235), region = 32  ;;  %s418_s7 = sshll.u32 (!%p141_p9), %s161_s6, 6 }
   0xf   : > { %s163_s8 = scalar_lea.vmem (!%p141_p9), [#allocation2], %s418_s7  ;;  %s429_s9 = sshll.u32 (!%p141_p9), %s587_s16, 6 }
  0x10   : > { %s348_s17 = scalar_lea.hbm (!%p141_p9), %s746_s3, %s429_s9  ;;  %s349_s19 = sshll.u32 (!%p141_p9), %s163_s8, 4  ;;  %s350_s19 = int_to_ptr.vmem [resolvable:$true] %s349_s19 }
  0x11   : > { %s351_s20 = sshll.u32 (!%p141_p9), %s348_s17, 4  ;;  %s352_s20 = int_to_ptr.hbm [resolvable:$true] %s351_s20 }
  0x13   : > { %s165_s24 = scalar_select %p164_p10, %s587_s16, 1  ;;  %v196_v12 = vld [vmem:[%s744_s1 + $0x18] sm:$0xff]  ;;  %v195_v13 = vld [vmem:[%s744_s1 + $0x10] sm:$0xff]  ;;  %v194_v14 = vld [vmem:[%s744_s1 + $0x8] sm:$0xff]  ;;  %v201_v25 = vlaneseq  ;;  %vm206_vm0 = vcmask 130112   ;;  %vm210_vm1 = vcmask 195712  }
  0x14   : > { %231 = vmatpush.msra.mxu0 %v196_v12  ;;  %v193_v15 = vld [vmem:[%s744_s1] sm:$0xff]  ;;  %v255_v16 = vld [vmem:[%s745_s2 + $0x78] sm:$0xff]  ;;  %v254_v17 = vld [vmem:[%s745_s2 + $0x70] sm:$0xff]  ;;  %vm214_vm2 = vcmask 261312   ;;  %vm216_vm3 = vcmask 261120   ;;  %s337_s16 = scalar_lea.sflag [#allocation3], %s161_s6 }
  0x15   : > { %s428_s25 = sshll.u32 %s165_s24, 6  ;;  %256 = vmatpush.msra.mxu1 %v255_v16  ;;  %v253_v18 = vld [vmem:[%s745_s2 + $0x68] sm:$0xff]  ;;  %v252_v19 = vld [vmem:[%s745_s2 + $0x60] sm:$0xff]  ;;  %v251_v20 = vld [vmem:[%s745_s2 + $0x58] sm:$0xff]  ;;  %v202_v30 = vand.u32 127, %v201_v25  ;;  %v297_v54 = vshrl.u32 %v201_v25, 7 }
  0x16   : > { %s168_s28 = scalar_lea.vmem %s743_s0, %s428_s25  ;;  %232 = vmatpush.msra.mxu0 %v195_v13  ;;  %v250_v21 = vld [vmem:[%s745_s2 + $0x50] sm:$0xff]  ;;  %v249_v22 = vld [vmem:[%s745_s2 + $0x48] sm:$0xff]  ;;  %v248_v23 = vld [vmem:[%s745_s2 + $0x40] sm:$0xff]  ;;  %s494_s24 = sshra.s32 %s352_s20, 4  ;;  %s495_s24 = int_to_ptr.hbm [resolvable:$true] %s494_s24 }
  0x17   : > { %v619_v0 = vld [vmem:[%s168_s28] sm:$0xff]  ;;  %v621_v1 = vld [vmem:[%s168_s28 + $0x8] sm:$0xff]  ;;  %v631_v6 = vld [vmem:[%s168_s28 + $0x10] sm:$0xff]  ;;  %257 = vmatpush.msra.mxu1 %v254_v17  ;;  %v204_v34 = vadd.s32 4294967288, %v202_v30  ;;  %v208_v35 = vadd.s32 4294967280, %v202_v30  ;;  %v212_v38 = vadd.s32 4294967272, %v202_v30  ;;  %471 = vset.pattern.permute.xlu2 %v297_v54  ;;  %p501_p0 = scmp.lt.s32.totalorder %s495_s24, %s746_s3 }
  0x18   : > { %v623_v2 = vld [vmem:[%s168_s28 + $0x20] sm:$0xff]  ;;  %v177_v3 = vadd.f32 %v621_v1, %v619_v0  ;;  %v627_v4 = vld [vmem:[%s168_s28 + $0x28] sm:$0xff]  ;;  %v633_v7 = vld [vmem:[%s168_s28 + $0x18] sm:$0xff]  ;;  %233 = vmatpush.msra.mxu0 %v194_v14  ;;  %v316_v55 = vadd.s32 24, %v297_v54  ;;  %v310_v56 = vadd.s32 16, %v297_v54  ;;  %v304_v16 = vadd.s32 8, %v297_v54 }
  0x19   : > { %v183_v5 = vadd.f32 %v627_v4, %v623_v2  ;;  %v635_v8 = vld [vmem:[%s168_s28 + $0x30] sm:$0xff]  ;;  %v637_v9 = vld [vmem:[%s168_s28 + $0x38] sm:$0xff]  ;;  %v180_v10 = vadd.f32 %v633_v7, %v631_v6  ;;  %258 = vmatpush.msra.mxu1 %v253_v18  ;;  %v245_v29 = vld [vmem:[%s745_s2 + $0x28] sm:$0xff]  ;;  %s496_s25 = scalar_lea.hbm %s495_s24, 64  ;;  %s500_s28 = scalar_lea.hbm %s746_s3, 128 }
  0x1a   : > { %178 = vadd.xlane.f32.xlu0 %v177_v3  ;;  %v186_v11 = vadd.f32 %v637_v9, %v635_v8  ;;  %234 = vmatpush.msra.mxu0 %v193_v15  ;;  %v247_v24 = vld [vmem:[%s745_s2 + $0x38] sm:$0xff]  ;;  %v246_v27 = vld [vmem:[%s745_s2 + $0x30] sm:$0xff]  ;;  %v244_v31 = vld [vmem:[%s745_s2 + $0x20] sm:$0xff]  ;;  %p497_p11 = scmp.ne.s32.totalorder %s495_s24, %s496_s25  ;;  %p502_p1 = scmp.lt.s32.totalorder %s500_s28, %s496_s25 }
  0x1b   : > { %184 = vadd.xlane.f32.xlu1 %v183_v5  ;;  %259 = vmatpush.msra.mxu1 %v252_v19  ;;  %v243_v32 = vld [vmem:[%s745_s2 + $0x18] sm:$0xff]  ;;  %v242_v39 = vld [vmem:[%s745_s2 + $0x10] sm:$0xff]  ;;  %v241_v50 = vld [vmem:[%s745_s2 + $0x8] sm:$0xff] }
  0x1c   : > { %v240_v51 = vld [vmem:[%s745_s2] sm:$0xff]  ;;  %474 = vset.pattern.permute.xlu1 %v316_v55  ;;  %473 = vset.pattern.permute.xlu0 %v310_v56  ;;  %p498_p12 = pnand %p497_p11, %p604_p5  ;;  %p503_p2 = por %p502_p1, %p501_p0 }
  0x1d   : > { %260 = vmatpush.msra.mxu1 %v251_v20 }
  0x1e   : > { %p499_p13 = pneg %p498_p12 }
  0x1f   : > { %261 = vmatpush.msra.mxu1 %v250_v21 }
  0x20   : > { %p504_p3 = pnand %p503_p2, %p499_p13 }
  0x21   : > { %262 = vmatpush.msra.mxu1 %v249_v22 }
  0x22   : > { %181 = vadd.xlane.f32.xlu0 %v180_v10 }
  0x23   : > { %187 = vadd.xlane.f32.xlu1 %v186_v11  ;;  %263 = vmatpush.msra.mxu1 %v248_v23 }
  0x25   : > { %264 = vmatpush.msra.mxu1 %v247_v24 }
  0x27   : > { %265 = vmatpush.msra.mxu1 %v246_v27 }
  0x29   : > { %266 = vmatpush.msra.mxu1 %v245_v29 }
  0x2b   : > { %267 = vmatpush.msra.mxu1 %v244_v31 }
  0x2d   : > { %268 = vmatpush.msra.mxu1 %v243_v32 }
  0x2f   : > { %269 = vmatpush.msra.mxu1 %v242_v39 }
  0x31   : > { %270 = vmatpush.msra.mxu1 %v241_v50 }
  0x33   : > { %271 = vmatpush.msra.mxu1 %v240_v51 }
  0x8d   : > { %v179_v26 = vpop.xlane.xlu0 %178 }
  0x8e   : > { %v185_v28 = vpop.xlane.xlu1 %184  ;;  %v189_v33 = vmul.f32 0.00390625, %v179_v26 }
  0x8f   : > { %v191_v36 = vmul.f32 0.00390625, %v185_v28 }
  0x90   : > { %v203_v43 = vperm.slane %v189_v33, %v202_v30 }
  0x91   : > { %v209_v45 = vperm.slane %v191_v36, %v208_v35 }
  0x95   : > { %v182_v37 = vpop.xlane.xlu0 %181 }
  0x96   : > { %v190_v40 = vmul.f32 0.00390625, %v182_v37  ;;  %v188_v41 = vpop.xlane.xlu1 %187 }
  0x97   : > { %v192_v42 = vmul.f32 0.00390625, %v188_v41 }
  0x98   : > { %v205_v44 = vperm.slane %v190_v40, %v204_v34 }
  0x99   : > { %v213_v46 = vperm.slane %v192_v42, %v212_v38 }
  0x9a   : > { %v207_v47 = vsel %vm206_vm0, %v205_v44, %v203_v43 }
  0x9b   : > { %v211_v48 = vsel %vm210_vm1, %v209_v45, %v207_v47 }
  0x9c   : > { %v215_v49 = vsel %vm214_vm2, %v213_v46, %v211_v48 }
  0x9d   : > { %421 = vmatmul.msk.f32.vlgmr.msra.gmra.mxu0 %vm216_vm3, %v215_v49 }
 0x11a   : > { %v236_v52 = vpop.f32.mrf.mxu0 }
 0x11b   : > { %v239_v53 = vmax.f32 %v236_v52, 0.0 }
 0x11d   : > { %272 = vmatmul.f32.vlgmr.msra.gmra.mxu1 %v239_v53 }
 0x19a   : > { %v273_v57 = vpop.f32.mrf.mxu1 }
 0x19b   : > { %v422_v58 = vmul.f32 -1.442695, %v273_v57 }
 0x19d   : > { %476 = vpow2.f32 %v422_v58 }
 0x1a3   : > { %v477_v59 = vpop.eup %476 }
 0x1a4   : > { %v279_v60 = vadd.f32 1.0, %v477_v59 }
 0x1a6   : > { %478 = vrcp.f32 %v279_v60  ;;  %v291_v3 = vand.u32 2147483648, %v279_v60  ;;  %v289_v10 = vand.u32 2147483647, %v279_v60  ;;  %vm285_vm5 = vweird.f32 %v279_v60 }
 0x1a8   : > { %v292_v12 = vor.u32 1.1754944e-38, %v291_v3  ;;  %vm290_vm7 = vcmp.eq.f32.partialorder %v289_v10, 8.507059e+37 }
 0x1ac   : > { %v479_v61 = vpop.eup %478 }
 0x1ad   : > { %v281_v62 = vmul.f32 %v479_v61, %v279_v60  ;;  %vm286_vm4 = vweird.f32 %v479_v61 }
 0x1ae   : > { %vm287_vm6 = vmor %vm285_vm5, %vm286_vm4 }
 0x1af   : > { %v282_v63 = vsub.f32 1.0, %v281_v62 }
 0x1b1   : > { %v283_v5 = vmul.f32 %v479_v61, %v282_v63 }
 0x1b3   : > { %v284_v11 = vadd.f32 %v479_v61, %v283_v5 }
 0x1b5   : > { %v288_v13 = vsel %vm287_vm6, %v479_v61, %v284_v11 }
 0x1b6   : > { %v293_v14 = vsel %vm290_vm7, %v292_v12, %v288_v13 }
 0x1b7   : > { %v295_v15 = vperm.slane %v293_v14, 0 }
 0x1b9   : > { %318 = vperm.xlu1 %474, %v295_v15   ;;  %312 = vperm.xlu0 %473, %v295_v15  }
 0x1ba   : > { %300 = vperm.xlu2 %471, %v295_v15  }
 0x1c1   : > { %475 = vset.pattern.permute.xlu0 %v316_v55 }
 0x1c2   : > { %472 = vset.pattern.permute.xlu2 %v304_v16 }
 0x1ca   : > { %306 = vperm.xlu2 %472, %v295_v15  }
 0x214   : > { %v301_v17 = vpop.permute.xlu2 %300 }
 0x215   : > { %v320_v18 = vmul.f32 %v301_v17, %v619_v0  ;;  %v321_v19 = vmul.f32 %v301_v17, %v621_v1 }
 0x217   : > { %328 = vst [vmem:[%s163_s8] sm:$0xff] %v320_v18 }
 0x218   : > { %329 = vst [vmem:[%s163_s8 + $0x8] sm:$0xff] %v321_v19 }
 0x224   : > { %v307_v20 = vpop.permute.xlu2 %306 }
 0x225   : > { %v322_v21 = vmul.f32 %v307_v20, %v631_v6  ;;  %v323_v22 = vmul.f32 %v307_v20, %v633_v7 }
 0x227   : > { %330 = vst [vmem:[%s163_s8 + $0x10] sm:$0xff] %v322_v21 }
 0x228   : > { %331 = vst [vmem:[%s163_s8 + $0x18] sm:$0xff] %v323_v22 }
 0x22b   : > { %v319_v23 = vpop.permute.xlu1 %318  ;;  %v313_v24 = vpop.permute.xlu0 %312 }
 0x22c   : > { %v326_v0 = vmul.f32 %v319_v23, %v635_v8  ;;  %v327_v1 = vmul.f32 %v319_v23, %v637_v9  ;;  %v324_v6 = vmul.f32 %v313_v24, %v623_v2  ;;  %v325_v7 = vmul.f32 %v313_v24, %v627_v4 }
 0x22e   : > { %334 = vst [vmem:[%s163_s8 + $0x30] sm:$0xff] %v326_v0 }
 0x22f   : > { %335 = vst [vmem:[%s163_s8 + $0x38] sm:$0xff] %v327_v1 }
 0x230   : > { %332 = vst [vmem:[%s163_s8 + $0x20] sm:$0xff] %v324_v6 }
 0x231   : > { %333 = vst [vmem:[%s163_s8 + $0x28] sm:$0xff] %v325_v7 }
 0x232   : > { %507 = shalt.err (!%p504_p3)
}
 0x233   : > { %s544_s4 = smov 256   ;;  %s545_s5 = smov 16  }
 0x234   : > { %430 = dma.vmem_to_hbm [thread:$0]  (%p604_p5), %s350_s19, 1024, %s352_s20, %s337_s16, %s544_s4, %s544_s4, %s545_s5  }
 0x235 PF: > { %p436_p4 = scmp.ge.s32.totalorder %s542_s15, 2  ;;  %s366_s6 = sand.u32 1, %s530_s12  }
 0x236   : > { %s367_s7 = scalar_lea.sflag [#allocation3], %s366_s6 }
 0x237   : > { %p433_p7 = pnand %p436_p4, %p608_p6 }
 0x239   : > { %p434_p8 = pneg %p433_p7 }
 0x23b   : > { %525 = dma.done.wait (%p434_p8), %s367_s7, 1024  }
 0x23c   : > { %527 = vsyncadd (%p434_p8), %s367_s7, 4294966272  ;;  %p13_p9 = scmp.ge.s32.totalorder %s591_s18, 4   ;;  %s749_s12 = smov %s534_s13 }
 0x23d   : > { %s750_s13 = smov %s538_s14  ;;  %s751_s14 = smov %s602_s21 }
 0x23e   : > { %s752_s15 = smov %s591_s18  ;;  %15 = sbr.rel (!%p13_p9) target bundleno = 3 (0x3), region = 67 }
 0x243   :  { %373 = vsyncpa [#allocation3], 1 }
 0x244   :  { %375 = vsyncpa [#allocation3 + $0x1], 1 }

</bundles_post_ra>
